<compile_context>
chip_gen: v7x
topology: tpu7x:2x2x1
jax: 0.10.0
libtpu: 0.0.40
codegen_flags: <defaults>
</compile_context>

<pallas_src>
import functools

import jax
import jax.numpy as jnp
from jax.experimental import pallas as pl
from jax.experimental.pallas import tpu as pltpu

_DEFAULT_TILE_N = 32768          # sweep 16384-65536; 32768 is a good default
_LANES = 128
_VMEM_TILE_BUDGET = 24 * 1024 * 1024   # conservative double-buffer budget (v7x-safe)


def _round_up(x: int, m: int) -> int:
    return ((x + m - 1) // m) * m


def _choose_tile(n: int, c: int, requested: int) -> int:
    """Pick the lane-tile size (multiple of 128, VMEM-aware, >=2 blocks if possible)."""
    if n <= _LANES:
        # Single full-extent block (block dims equal to the array dims are legal).
        return n
    # Two pipeline buffers of a (c, tile) f32 tile must fit the scoped-VMEM budget.
    max_cols_by_vmem = max(_LANES, _VMEM_TILE_BUDGET // (2 * c * 4))
    # Keep at least 2 grid steps when N allows so v7x's two TensorCores both get work.
    half = _round_up(-(-n // 2), _LANES)
    tile = min(requested, max_cols_by_vmem, half)
    tile = max(_LANES, (tile // _LANES) * _LANES)
    return tile


def _cross_entropy_block_kernel(logits_ref, targets_ref, out_ref, *, n_true, tile_n):
    """One N-tile of cross entropy, reduced to a single per-block partial sum.

    logits_ref : (C, TILE_N)  float  (class axis on sublanes, examples on lanes)
    targets_ref: (1, TILE_N)  int32
    out_ref    : (1, 128)     float32; the block's summed loss broadcast to all lanes
    """
    logits = logits_ref[...].astype(jnp.float32)                     # (C, T)
    tgt = targets_ref[...]                                           # (1, T)

    # Numerically-stable shifted logits, reused for both the sum-exp and the
    # one-hot target gather (the max cancels in lse - target_logit).
    col_max = jnp.max(logits, axis=0, keepdims=True)                 # (1, T)
    shift = logits - col_max                                         # (C, T)
    lse_shift = jnp.log(jnp.sum(jnp.exp(shift), axis=0, keepdims=True))  # (1, T)

    # Target-class gather via one-hot mask (no dynamic gather on TPU).
    cls_idx = jax.lax.broadcasted_iota(jnp.int32, shift.shape, 0)    # (C, T)
    tgt_shift = jnp.sum(jnp.where(cls_idx == tgt, shift, 0.0),
                        axis=0, keepdims=True)                       # (1, T)

    per_example = lse_shift - tgt_shift                              # (1, T)

    def _store(pe):
        out_ref[...] = jnp.broadcast_to(jnp.sum(pe), (1, _LANES))

    if n_true % tile_n == 0:
        # No ragged edge anywhere: skip the mask entirely.
        _store(per_example)
    else:
        i = pl.program_id(0)
        last = pl.num_programs(0) - 1

        @pl.when(i == last)
        def _():
            # Zero padded tail columns (edge-block DMA leaves garbage there);
            # jnp.where also quashes any NaN/inf produced from that garbage.
            col = (jax.lax.broadcasted_iota(jnp.int32, per_example.shape, 1)
                   + i * tile_n)
            _store(jnp.where(col < n_true, per_example, 0.0))

        @pl.when(i != last)
        def _():
            _store(per_example)


def cross_entropy_pallas(logits, targets, *, tile_n=_DEFAULT_TILE_N):
    """logits: (N, C) float; targets: (N,) int -> scalar mean cross-entropy."""
    n, c = logits.shape

    # Lane-dense layout: big N axis on lanes, small class axis on sublanes.
    # allow_input_fusion lets XLA fold this transpose into the pallas_call operand.
    logits_t = logits.T                                    # (C, N), original dtype
    tgt_row = targets.astype(jnp.int32).reshape(1, n)      # (1, N)

    tile = _choose_tile(n, c, tile_n)
    num_blocks = pl.cdiv(n, tile)

    kernel = functools.partial(_cross_entropy_block_kernel, n_true=n, tile_n=tile)

    partials = pl.pallas_call(
        kernel,
        out_shape=jax.ShapeDtypeStruct((1, num_blocks * _LANES), jnp.float32),
        grid=(num_blocks,),
        in_specs=[
            pl.BlockSpec((c, tile), lambda i: (0, i)),     # logits tile (lane-dense)
            pl.BlockSpec((1, tile), lambda i: (0, i)),     # targets row (lane-dense)
        ],
        out_specs=pl.BlockSpec((1, _LANES), lambda i: (0, i)),
        compiler_params=pltpu.CompilerParams(
            dimension_semantics=("parallel",),             # shard blocks across TCs
            allow_input_fusion=[True, False],              # fold the transpose in
            vmem_limit_bytes=32 * 1024 * 1024,             # v7x-safe (64 MiB physical)
        ),
    )(logits_t, tgt_row)

    # Tiny trailing reduction over num_blocks partials; divide by the TRUE N.
    block_sums = partials.reshape(num_blocks, _LANES)[:, 0]
    return jnp.sum(block_sums) / jnp.float32(n)


def conformer_loss(predictions, targets):
    """Pallas equivalent of ConformerLoss.forward."""
    return {"loss": cross_entropy_pallas(predictions["root"], targets["root"])}


def _reference_loss(predictions, targets):
    logits = predictions["root"].astype(jnp.float32)
    tgt = targets["root"]
    logp = jax.nn.log_softmax(logits, axis=-1)
    nll = -jnp.take_along_axis(logp, tgt[:, None].astype(jnp.int32), axis=-1)[:, 0]
    return jnp.mean(nll)


if __name__ == "__main__":
    key = jax.random.PRNGKey(0)

    # Primary small example (matches the module's forward signature).
    N, C = 8, 16  # 8 frames, 16 chord-root classes
    k1, k2, k3, k4 = jax.random.split(key, 4)
    predictions = {"root": jax.random.normal(k1, (N, C), dtype=jnp.float32)}
    targets = {"root": jax.random.randint(k2, (N,), 0, C, dtype=jnp.int32)}

    out = conformer_loss(predictions, targets)
    loss = jax.block_until_ready(out["loss"])
    ref = _reference_loss(predictions, targets)
    assert jnp.allclose(loss, ref, atol=1e-5, rtol=1e-5), (loss, ref)

    # Secondary check: exercises the multi-block grid and the ragged edge-block
    # masking path (no wrapper padding) with a non-multiple-of-8 class count.
    N2, C2 = 300, 13
    predictions2 = {"root": jax.random.normal(k3, (N2, C2), dtype=jnp.float32)}
    targets2 = {"root": jax.random.randint(k4, (N2,), 0, C2, dtype=jnp.int32)}

    out2 = conformer_loss(predictions2, targets2)
    loss2 = jax.block_until_ready(out2["loss"])
    ref2 = _reference_loss(predictions2, targets2)
    assert jnp.allclose(loss2, ref2, atol=1e-5, rtol=1e-5), (loss2, ref2)

    print("KERNEL_OK")
</pallas_src>

<mosaic_0001>
module attributes {stable_mosaic.version = 11 : i64} {
  func.func @_cross_entropy_block_kernel(%arg0: i32, %arg1: memref<16x8xf32, #tpu.memory_space<vmem>>, %arg2: memref<1x8xi32, #tpu.memory_space<vmem>>, %arg3: memref<1x128xf32, #tpu.memory_space<vmem>>) attributes {dimension_semantics = [#tpu.dimension_semantics<parallel>], iteration_bounds = array<i64: 1>, scalar_prefetch = 0 : i64, scratch_operands = 0 : i64, tpu.core_type = #tpu.core_type<tc>, window_params = [{transform_indices = @transform_0, window_bounds = array<i64: 16, 8>}, {transform_indices = @transform_1, window_bounds = array<i64: 1, 8>}, {transform_indices = @transform_2, window_bounds = array<i64: 1, 128>}]} {
    %c0 = arith.constant 0 : index
    %c0_0 = arith.constant 0 : index
    %0 = vector.load %arg1[%c0, %c0_0] : memref<16x8xf32, #tpu.memory_space<vmem>>, vector<16x8xf32>
    %c0_1 = arith.constant 0 : index
    %c0_2 = arith.constant 0 : index
    %1 = vector.load %arg2[%c0_1, %c0_2] : memref<1x8xi32, #tpu.memory_space<vmem>>, vector<1x8xi32>
    %cst = arith.constant dense<0xFF800000> : vector<8xf32>
    %2 = vector.multi_reduction <maximumf>, %0, %cst [0] : vector<16x8xf32> to vector<8xf32>
    %3 = vector.shape_cast %2 : vector<8xf32> to vector<1x8xf32>
    %4 = vector.broadcast %3 : vector<1x8xf32> to vector<16x8xf32>
    %5 = arith.subf %0, %4 : vector<16x8xf32>
    %6 = math.exp %5 : vector<16x8xf32>
    %cst_3 = arith.constant dense<0.000000e+00> : vector<8xf32>
    %7 = vector.multi_reduction <add>, %6, %cst_3 [0] : vector<16x8xf32> to vector<8xf32>
    %8 = vector.shape_cast %7 : vector<8xf32> to vector<1x8xf32>
    %9 = math.log %8 : vector<1x8xf32>
    %10 = tpu.iota {dimensions = array<i32: 0>} : vector<16x8xi32>
    %11 = vector.broadcast %1 : vector<1x8xi32> to vector<16x8xi32>
    %12 = arith.cmpi eq, %10, %11 : vector<16x8xi32>
    %cst_4 = arith.constant 0.000000e+00 : f32
    %13 = vector.broadcast %cst_4 : f32 to vector<16x8xf32>
    %14 = arith.select %12, %5, %13 : vector<16x8xi1>, vector<16x8xf32>
    %cst_5 = arith.constant dense<0.000000e+00> : vector<8xf32>
    %15 = vector.multi_reduction <add>, %14, %cst_5 [0] : vector<16x8xf32> to vector<8xf32>
    %16 = vector.shape_cast %15 : vector<8xf32> to vector<1x8xf32>
    %17 = arith.subf %9, %16 : vector<1x8xf32>
    %18 = vector.shape_cast %17 : vector<1x8xf32> to vector<1x1x8xf32>
    %cst_6 = arith.constant dense<0.000000e+00> : vector<1xf32>
    %19 = vector.multi_reduction <add>, %18, %cst_6 [1, 2] : vector<1x1x8xf32> to vector<1xf32>
    %20 = vector.shape_cast %19 : vector<1xf32> to vector<1x1x1xf32>
    %21 = vector.extract %20[0, 0, 0] : f32 from vector<1x1x1xf32>
    %22 = vector.broadcast %21 : f32 to vector<1x128xf32>
    %c0_7 = arith.constant 0 : index
    %c0_8 = arith.constant 0 : index
    %23 = vector.load %arg3[%c0_7, %c0_8] : memref<1x128xf32, #tpu.memory_space<vmem>>, vector<1x128xf32>
    tpu.vector_store %arg3[%c0_7, %c0_8], %22 {strides = array<i32>} : memref<1x128xf32, #tpu.memory_space<vmem>>, vector<1x128xf32>,
    return
  }
  func.func @transform_0(%arg0: i32) -> (i32, i32) {
    %c0_i32 = arith.constant 0 : i32
    %c0_i32_0 = arith.constant 0 : i32
    return %c0_i32, %arg0 : i32, i32
  }
  func.func @transform_1(%arg0: i32) -> (i32, i32) {
    %c0_i32 = arith.constant 0 : i32
    %c0_i32_0 = arith.constant 0 : i32
    return %c0_i32, %arg0 : i32, i32
  }
  func.func @transform_2(%arg0: i32) -> (i32, i32) {
    %c0_i32 = arith.constant 0 : i32
    %c0_i32_0 = arith.constant 0 : i32
    return %c0_i32, %arg0 : i32, i32
  }
}

</mosaic_0001>

<bundles_post_ra>
// kernel: tpu_custom_call.1
= control target key start
LH: loop header
LB: loop body
LE: loop exit
PB: predicated region body
PF: predicated region fallthrough
CT: control target
= control target key end

     0   :  { %vm15_vm0 = vcmask 64512   ;;  %s167_s0 = inlined_call_operand.vmem [shape: f32[16,8], index: 0, kind: input, shape index: {}]   ;;  %s168_s1 = inlined_call_operand.vmem [shape: s32[1,8], index: 1, kind: input, shape index: {}]   ;;  %s169_s2 = inlined_call_operand.hbm [shape: f32[1,128], index: 2, kind: output, shape index: {}]  }
   0x1   :  { %v12_v0 = vld [vmem:[%s167_s0] sm:$0xff]  ;;  %v13_v1 = vld [vmem:[%s167_s0 + $0x8] sm:$0xff] }
   0x2   :  { %v16_v2 = vsel %vm15_vm0, %v12_v0, -inf  ;;  %v17_v3 = vsel %vm15_vm0, %v13_v1, -inf }
   0x3   :  { %7 = vsyncpa [#allocation3], 0  ;;  %v18_v4 = vmax.f32 %v16_v2, %v17_v3  ;;  %v42_v9 = vlaneseq  ;;  %v90_v18 = vld [vmem:[%s168_s1] ss:$0 sm:$0xff]  ;;  %vm63_vm3 = vcmask 57344   ;;  %s124_s1 = smov [#allocation2]  }
   0x4   :  { %s82_s14 = sshll.u32 %s124_s1, 4  ;;  %s83_s14 = int_to_ptr.vmem [resolvable:$true] %s82_s14 }
   0x5   :  { %v19_v5 = vrot.slane %v18_v4, 4  ;;  %v43_v12 = vshrl.u32 %v42_v9, 7  ;;  %s100_s16 = scalar_lea.vmem %s83_s14, 16  ;;  %s104_s17 = scalar_lea.vmem %s83_s14, 32 }
   0x6   :  { %p101_p0 = scmp.ne.s32.totalorder %s83_s14, %s100_s16  ;;  %p105_p1 = scmp.lt.s32.totalorder %s83_s14, %s83_s14 }
   0x7   :  { %v20_v6 = vmax.f32 %v18_v4, %v19_v5  ;;  %v44_v17 = vadd.s32 8, %v43_v12  ;;  %vm49_vm1 = vcmp.eq.s32.totalorder %v43_v12, %v90_v18  ;;  %p106_p2 = scmp.lt.s32.totalorder %s104_s17, %s100_s16 }
   0x9   :  { %v21_v7 = vrot.slane %v20_v6, 2  ;;  %vm50_vm2 = vcmp.eq.s32.totalorder %v44_v17, %v90_v18  ;;  %p107_p3 = por %p106_p2, %p105_p1 }
   0xb   :  { %v22_v8 = vmax.f32 %v20_v6, %v21_v7  ;;  %p108_p4 = pnand %p107_p3, %p101_p0 }
   0xd   :  { %v23_v10 = vrot.slane %v22_v8, 1 }
   0xf   :  { %v24_v11 = vmax.f32 %v22_v8, %v23_v10 }
  0x11   :  { %v25_v13 = vsub.f32 %v12_v0, %v24_v11  ;;  %v26_v14 = vsub.f32 %v13_v1, %v24_v11 }
  0x13   :  { %v27_v15 = vmul.f32 1.442695, %v25_v13  ;;  %v29_v16 = vmul.f32 1.442695, %v26_v14  ;;  %v51_v19 = vsel %vm49_vm1, %v25_v13, 0.0  ;;  %v52_v20 = vsel %vm50_vm2, %v26_v14, 0.0 }
  0x14   :  { %v53_v21 = vsel %vm15_vm0, %v51_v19, 0.0  ;;  %v54_v22 = vsel %vm15_vm0, %v52_v20, 0.0 }
  0x15   :  { %94 = vpow2.f32 %v27_v15  ;;  %v55_v27 = vadd.f32 %v54_v22, %v53_v21 }
  0x16   :  { %96 = vpow2.f32 %v29_v16 }
  0x17   :  { %v56_v30 = vrot.slane %v55_v27, 4 }
  0x19   :  { %v57_v33 = vadd.f32 %v56_v30, %v55_v27 }
  0x1b   :  { %v58_v36 = vrot.slane %v57_v33, 2 }
  0x1d   :  { %v59_v38 = vadd.f32 %v58_v36, %v57_v33 }
  0x1f   :  { %v95_v23 = vpop.eup %94  ;;  %v60_v39 = vrot.slane %v59_v38, 1 }
  0x20   :  { %v97_v24 = vpop.eup %96  ;;  %v31_v25 = vsel %vm15_vm0, %v95_v23, 0.0 }
  0x21   :  { %v32_v26 = vsel %vm15_vm0, %v97_v24, 0.0  ;;  %v61_v40 = vadd.f32 %v60_v39, %v59_v38 }
  0x22   :  { %v33_v28 = vadd.f32 %v32_v26, %v31_v25 }
  0x24   :  { %v34_v29 = vrot.slane %v33_v28, 4 }
  0x26   :  { %v35_v31 = vadd.f32 %v34_v29, %v33_v28 }
  0x28   :  { %v36_v32 = vrot.slane %v35_v31, 2 }
  0x2a   :  { %v37_v34 = vadd.f32 %v36_v32, %v35_v31 }
  0x2c   :  { %v38_v35 = vrot.slane %v37_v34, 1 }
  0x2e   :  { %v39_v37 = vadd.f32 %v38_v35, %v37_v34 }
  0x30   :  { %98 = vlog2.f32 %v39_v37 }
  0x3a   :  { %v99_v41 = vpop.eup %98 }
  0x3b   :  { %v41_v42 = vmul.f32 0.6931472, %v99_v41 }
  0x3d   :  { %v62_v43 = vsub.f32 %v41_v42, %v61_v40 }
  0x3f   :  { %v64_v44 = vsel %vm63_vm3, %v62_v43, 0.0 }
  0x40   :  { %65 = vadd.xlane.f32.xlu0 %v64_v44 }
  0xcd   :  { %v66_v45 = vpop.xlane.xlu0 %65 }
  0xce   :  { %v67_v46 = vrot.slane %v66_v45, 4 }
  0xd0   :  { %v68_v47 = vadd.f32 %v67_v46, %v66_v45 }
  0xd2   :  { %v69_v48 = vrot.slane %v68_v47, 2 }
  0xd4   :  { %v70_v49 = vadd.f32 %v69_v48, %v68_v47 }
  0xd6   :  { %v71_v50 = vrot.slane %v70_v49, 1 }
  0xd8   :  { %v72_v51 = vadd.f32 %v71_v50, %v70_v49 }
  0xda   :  { %91 = vpush %v72_v51 }
 0x10b   :  { %s92_s15 = spop %91 }
 0x10c   :  { %v74_v52 = vstv %s92_s15 }
 0x10d   :  { %75 = vst [vmem:[#allocation2] sm:$0x1] %v74_v52 }
 0x10e   :  { %111 = shalt.err (!%p108_p4)
}
 0x10f   :  { %s112_s20 = scalar_lea.hbm %s169_s2, 16 }
 0x110   :  { %p113_p5 = scmp.ne.s32.totalorder %s169_s2, %s112_s20  ;;  %p116_p6 = scmp.lt.u32.totalorder %s112_s20, %s169_s2 }
 0x112   :  { %p118_p7 = pnand %p116_p6, %p113_p5 }
 0x114   :  { %121 = shalt.err (!%p118_p7)
}
 0x115   :  { %85 = dma.vmem_to_hbm [thread:$0]  %s83_s14, 16, %s169_s2, [#allocation3]  }
 0x116   :  { %122 = dma.done.wait [#allocation3], 16  }
 0x117   :  { %123 = vsyncadd [#allocation3], 4294967280 }
 0x118   :  { %89 = vsyncpa [#allocation3], 1 }

</bundles_post_ra>
